<compile_context>
chip_gen: v6e
topology: v6e:2x2x1
jax: 0.10.0
libtpu: 0.0.40
codegen_flags: <defaults>
</compile_context>

<pallas_src>
import jax
import jax.numpy as jnp
from jax.experimental import pallas as pl
from jax.experimental.pallas import tpu as pltpu


def conv1x1_kernel(x_ref, w_ref, o_ref):
    # x_ref: (Cin, tile_m)   channel-major activation slab
    # w_ref: (Cout, Cin)     weight exactly as stored by the conv (OI layout)
    # o_ref: (Cout, tile_m)  channel-major output (already NCHW ordered)
    x = x_ref[...].astype(jnp.bfloat16)
    w = w_ref[...].astype(jnp.bfloat16)
    # out[o, m] = sum_c w[o, c] * x[c, m]  (contract Cin of both operands)
    o_ref[...] = jax.lax.dot_general(
        w, x,
        dimension_numbers=(((1,), (0,)), ((), ())),
        preferred_element_type=jnp.float32,
    ).astype(o_ref.dtype)


def conv1x1(x_nchw, w_oihw, *, vmem_limit_bytes=32 << 20):
    """1x1 conv, stride 1, no bias.  x_nchw: (N, Cin, H, W), w_oihw: (Cout, Cin, 1, 1)."""
    N, Cin, H, W = x_nchw.shape
    Cout = w_oihw.shape[0]
    HW = H * W

    # Free reshapes only -- no data movement in the wrapper.
    x_mat = x_nchw.reshape(N, Cin, HW)     # per-sample (Cin, HW) slabs
    w_mat = w_oihw.reshape(Cout, Cin)      # (Cout, Cin), used as-is

    # M tiling: lane-dense tiles when HW is a multiple of 128; otherwise a single
    # full-extent block (valid per the "equal full dim" BlockSpec rule).
    if HW % 128 == 0:
        tile_m = min(HW, 512)
    else:
        tile_m = HW
    grid = (N, HW // tile_m)

    out = pl.pallas_call(
        conv1x1_kernel,
        out_shape=jax.ShapeDtypeStruct((N, Cout, HW), x_nchw.dtype),
        grid=grid,
        in_specs=[
            # Batch dim squeezed out; activation tile (Cin, tile_m).
            pl.BlockSpec((None, Cin, tile_m), lambda n, m: (n, 0, m)),
            # Weight: grid-invariant block -> stays resident in VMEM.
            pl.BlockSpec((Cout, Cin), lambda n, m: (0, 0)),
        ],
        out_specs=pl.BlockSpec((None, Cout, tile_m), lambda n, m: (n, 0, m)),
        compiler_params=pltpu.CompilerParams(
            dimension_semantics=("parallel", "parallel"),
            vmem_limit_bytes=vmem_limit_bytes,  # safe on v7x's 64 MiB VMEM too
        ),
    )(x_mat, w_mat)

    # (N, Cout, HW) is already channel-major: reshape straight back to NCHW (free).
    return out.reshape(N, Cout, H, W)


if __name__ == "__main__":
    key = jax.random.PRNGKey(0)
    kx, kw = jax.random.split(key)

    # Shapes implied by the module: input (1, 352, 14, 14), weight (128, 352, 1, 1).
    N, Cin, H, W = 1, 352, 14, 14
    Cout = 128

    x = jax.random.normal(kx, (N, Cin, H, W), dtype=jnp.float32)
    # Deterministic kaiming-uniform-like init (bound = 1/sqrt(fan_in) for 1x1 kernel).
    bound = 1.0 / jnp.sqrt(jnp.float32(Cin))
    w = jax.random.uniform(kw, (Cout, Cin, 1, 1), dtype=jnp.float32,
                           minval=-bound, maxval=bound)

    y = jax.block_until_ready(conv1x1(x, w))

    # Reference check against plain JAX einsum (same semantics as PyTorch 1x1 conv).
    y_ref = jnp.einsum("nchw,oc->nohw", x, w.reshape(Cout, Cin))
    assert y.shape == (N, Cout, H, W), y.shape
    # bf16 MXU inputs with f32 accumulation -> ~1e-2 relative agreement expected.
    max_err = float(jnp.max(jnp.abs(y - y_ref)))
    assert jnp.allclose(y, y_ref, atol=2e-2, rtol=2e-2), max_err

    print("KERNEL_OK")
</pallas_src>

<mosaic_0001>
module attributes {stable_mosaic.version = 11 : i64} {
  func.func @conv1x1_kernel(%arg0: i32, %arg1: i32, %arg2: memref<1x352x196xf32, #tpu.memory_space<vmem>>, %arg3: memref<128x352xf32, #tpu.memory_space<vmem>>, %arg4: memref<1x128x196xf32, #tpu.memory_space<vmem>>) attributes {dimension_semantics = [#tpu.dimension_semantics<parallel>, #tpu.dimension_semantics<parallel>], iteration_bounds = array<i64: 1, 1>, scalar_prefetch = 0 : i64, scratch_operands = 0 : i64, tpu.core_type = #tpu.core_type<tc>, window_params = [{transform_indices = @transform_0, window_bounds = array<i64: 1, 352, 196>}, {pipeline_mode = #tpu.pipeline_mode<synchronous>, transform_indices = @transform_1, window_bounds = array<i64: 128, 352>}, {transform_indices = @transform_2, window_bounds = array<i64: 1, 128, 196>}]} {
    %c0 = arith.constant 0 : index
    %c0_0 = arith.constant 0 : index
    %c0_1 = arith.constant 0 : index
    %0 = vector.load %arg2[%c0, %c0_0, %c0_1] : memref<1x352x196xf32, #tpu.memory_space<vmem>>, vector<1x352x196xf32>
    %1 = vector.shape_cast %0 : vector<1x352x196xf32> to vector<352x196xf32>
    %2 = arith.truncf %1 : vector<352x196xf32> to vector<352x196xbf16>
    %c0_2 = arith.constant 0 : index
    %c0_3 = arith.constant 0 : index
    %3 = vector.load %arg3[%c0_2, %c0_3] : memref<128x352xf32, #tpu.memory_space<vmem>>, vector<128x352xf32>
    %4 = arith.truncf %3 : vector<128x352xf32> to vector<128x352xbf16>
    %cst = arith.constant dense<0.000000e+00> : vector<128x196xf32>
    %5 = tpu.matmul %4, %2, %cst {dimension_numbers = #tpu.dot_dimension_numbers<[1], [0], [0], [1], [0, 0, 1, 1], [], []>} : vector<128x352xbf16>, vector<352x196xbf16>, vector<128x196xf32> -> vector<128x196xf32>
    %c0_4 = arith.constant 0 : index
    %c0_5 = arith.constant 0 : index
    %c0_6 = arith.constant 0 : index
    %6 = vector.load %arg4[%c0_4, %c0_5, %c0_6] : memref<1x128x196xf32, #tpu.memory_space<vmem>>, vector<1x128x196xf32>
    %7 = vector.shape_cast %6 : vector<1x128x196xf32> to vector<128x196xf32>
    %8 = vector.shape_cast %5 : vector<128x196xf32> to vector<1x128x196xf32>
    tpu.vector_store %arg4[%c0_4, %c0_5, %c0_6], %8 {strides = array<i32>} : memref<1x128x196xf32, #tpu.memory_space<vmem>>, vector<1x128x196xf32>,
    return
  }
  func.func @transform_0(%arg0: i32, %arg1: i32) -> (i32, i32, i32) {
    %c0_i32 = arith.constant 0 : i32
    %c0_i32_0 = arith.constant 0 : i32
    return %arg0, %c0_i32, %arg1 : i32, i32, i32
  }
  func.func @transform_1(%arg0: i32, %arg1: i32) -> (i32, i32) {
    %c0_i32 = arith.constant 0 : i32
    %c0_i32_0 = arith.constant 0 : i32
    %c0_i32_1 = arith.constant 0 : i32
    return %c0_i32, %c0_i32_0 : i32, i32
  }
  func.func @transform_2(%arg0: i32, %arg1: i32) -> (i32, i32, i32) {
    %c0_i32 = arith.constant 0 : i32
    %c0_i32_0 = arith.constant 0 : i32
    return %arg0, %c0_i32, %arg1 : i32, i32, i32
  }
}

</mosaic_0001>

<bundles_post_ra>
// kernel: tpu_custom_call.1
= control target key start
LH: loop header
LB: loop body
LE: loop exit
PB: predicated region body
PF: predicated region fallthrough
CT: control target
= control target key end

     0   :  { %v513_v3 = vmov 0   ;;  %vm216_vm0 = vcmask 785408   ;;  %vm468_vm1 = vcmask 556032   ;;  %s1065_s0 = inlined_call_operand.vmem [shape: f32[1,352,196], index: 0, kind: input, shape index: {}]   ;;  %s1066_s1 = inlined_call_operand.vmem [shape: f32[128,352], index: 1, kind: input, shape index: {}]   ;;  %s1067_s2 = inlined_call_operand.vmem [shape: f32[1,128,196], index: 2, kind: output, shape index: {}]  }
   0x1   :  { %v41_v0 = vld [vmem:[%s1065_s0 + $0xe8] sm:$0xff]  ;;  %v43_v1 = vld [vmem:[%s1065_s0 + $0xf8] sm:$0xff]  ;;  %v40_v2 = vld [vmem:[%s1065_s0 + $0xe0] sm:$0xff]  ;;  %386 = vmatprep.mubr.bf16.mxu1 %v513_v3 }
   0x2   :  { %v115_v4 = vpack.c.bf16 %v43_v1, %v41_v0  ;;  %v42_v5 = vld [vmem:[%s1065_s0 + $0xf0] sm:$0xff]  ;;  %v37_v6 = vld [vmem:[%s1065_s0 + $0xc8] sm:$0xff]  ;;  %v39_v7 = vld [vmem:[%s1065_s0 + $0xd8] sm:$0xff] }
   0x3   :  { %v114_v8 = vpack.c.bf16 %v42_v5, %v40_v2  ;;  %v113_v9 = vpack.c.bf16 %v39_v7, %v37_v6  ;;  %v36_v10 = vld [vmem:[%s1065_s0 + $0xc0] sm:$0xff]  ;;  %v38_v11 = vld [vmem:[%s1065_s0 + $0xd0] sm:$0xff]  ;;  %v33_v12 = vld [vmem:[%s1065_s0 + $0xa8] sm:$0xff] }
   0x4   :  { %241 = vmatprep.subr.bf16.mxu0 %v115_v4  ;;  %v35_v13 = vld [vmem:[%s1065_s0 + $0xb8] sm:$0xff]  ;;  %v112_v14 = vpack.c.bf16 %v38_v11, %v36_v10  ;;  %v32_v16 = vld [vmem:[%s1065_s0 + $0xa0] sm:$0xff]  ;;  %v34_v17 = vld [vmem:[%s1065_s0 + $0xb0] sm:$0xff] }
   0x5   :  { %242 = vmatpush1.bf16.msra.mxu0 %v114_v8  ;;  %v111_v15 = vpack.c.bf16 %v35_v13, %v33_v12  ;;  %v29_v18 = vld [vmem:[%s1065_s0 + $0x88] sm:$0xff]  ;;  %v31_v19 = vld [vmem:[%s1065_s0 + $0x98] sm:$0xff]  ;;  %v110_v20 = vpack.c.bf16 %v34_v17, %v32_v16  ;;  %v28_v22 = vld [vmem:[%s1065_s0 + $0x80] sm:$0xff] }
   0x6   :  { %243 = vmatprep.subr.bf16.mxu0 %v113_v9  ;;  %v109_v21 = vpack.c.bf16 %v31_v19, %v29_v18  ;;  %v30_v23 = vld [vmem:[%s1065_s0 + $0x90] sm:$0xff]  ;;  %v25_v24 = vld [vmem:[%s1065_s0 + $0x68] sm:$0xff]  ;;  %v27_v25 = vld [vmem:[%s1065_s0 + $0x78] sm:$0xff] }
   0x7   :  { %v108_v26 = vpack.c.bf16 %v30_v23, %v28_v22  ;;  %v97_v27 = vld [vmem:[%s1065_s0 + $0x2a8] sm:$0xff]  ;;  %v99_v28 = vld [vmem:[%s1065_s0 + $0x2b8] sm:$0xff]  ;;  %v96_v29 = vld [vmem:[%s1065_s0 + $0x2a0] sm:$0xff]  ;;  %v107_v30 = vpack.c.bf16 %v27_v25, %v25_v24 }
   0x8   :  { %v24_v31 = vld [vmem:[%s1065_s0 + $0x60] sm:$0xff]  ;;  %v26_v32 = vld [vmem:[%s1065_s0 + $0x70] sm:$0xff]  ;;  %v143_v33 = vpack.c.bf16 %v99_v28, %v97_v27  ;;  %v21_v35 = vld [vmem:[%s1065_s0 + $0x48] sm:$0xff] }
   0x9   :  { %244 = vmatpush1.bf16.msra.mxu0 %v112_v14  ;;  %v98_v34 = vld [vmem:[%s1065_s0 + $0x2b0] sm:$0xff]  ;;  %v23_v36 = vld [vmem:[%s1065_s0 + $0x58] sm:$0xff]  ;;  %v93_v38 = vld [vmem:[%s1065_s0 + $0x288] sm:$0xff]  ;;  %v106_v42 = vpack.c.bf16 %v26_v32, %v24_v31 }
   0xa   :  { %245 = vmatprep.subr.bf16.mxu0 %v111_v15  ;;  %v142_v37 = vpack.c.bf16 %v98_v34, %v96_v29  ;;  %358 = vmatprep.subr.bf16.mxu1 %v143_v33  ;;  %v95_v39 = vld [vmem:[%s1065_s0 + $0x298] sm:$0xff]  ;;  %v92_v40 = vld [vmem:[%s1065_s0 + $0x280] sm:$0xff]  ;;  %v94_v41 = vld [vmem:[%s1065_s0 + $0x290] sm:$0xff]  ;;  %v105_v47 = vpack.c.bf16 %v23_v36, %v21_v35 }
   0xb   :  { %v20_v43 = vld [vmem:[%s1065_s0 + $0x40] sm:$0xff]  ;;  %v22_v44 = vld [vmem:[%s1065_s0 + $0x50] sm:$0xff]  ;;  %v141_v45 = vpack.c.bf16 %v95_v39, %v93_v38  ;;  %v140_v46 = vpack.c.bf16 %v94_v41, %v92_v40  ;;  %v17_v48 = vld [vmem:[%s1065_s0 + $0x28] sm:$0xff] }
   0xc   :  { %359 = vmatpush1.bf16.msra.mxu1 %v142_v37  ;;  %v89_v49 = vld [vmem:[%s1065_s0 + $0x268] sm:$0xff]  ;;  %v91_v50 = vld [vmem:[%s1065_s0 + $0x278] sm:$0xff]  ;;  %v88_v53 = vld [vmem:[%s1065_s0 + $0x260] sm:$0xff]  ;;  %v104_v55 = vpack.c.bf16 %v22_v44, %v20_v43 }
   0xd   :  { %246 = vmatpush1.bf16.msra.mxu0 %v110_v20  ;;  %v19_v51 = vld [vmem:[%s1065_s0 + $0x38] sm:$0xff]  ;;  %360 = vmatprep.subr.bf16.mxu1 %v141_v45  ;;  %v139_v52 = vpack.c.bf16 %v91_v50, %v89_v49  ;;  %v90_v54 = vld [vmem:[%s1065_s0 + $0x270] sm:$0xff]  ;;  %v16_v56 = vld [vmem:[%s1065_s0 + $0x20] sm:$0xff] }
   0xe   :  { %247 = vmatprep.subr.bf16.mxu0 %v109_v21  ;;  %v138_v57 = vpack.c.bf16 %v90_v54, %v88_v53  ;;  %v85_v58 = vld [vmem:[%s1065_s0 + $0x248] sm:$0xff]  ;;  %v87_v59 = vld [vmem:[%s1065_s0 + $0x258] sm:$0xff]  ;;  %v103_v60 = vpack.c.bf16 %v19_v51, %v17_v48  ;;  %v18_v61 = vld [vmem:[%s1065_s0 + $0x30] sm:$0xff] }
   0xf   :  { %v137_v62 = vpack.c.bf16 %v87_v59, %v85_v58  ;;  %v84_v63 = vld [vmem:[%s1065_s0 + $0x240] sm:$0xff]  ;;  %v86_v0 = vld [vmem:[%s1065_s0 + $0x250] sm:$0xff]  ;;  %v13_v1 = vld [vmem:[%s1065_s0 + $0x8] sm:$0xff]  ;;  %v102_v6 = vpack.c.bf16 %v18_v61, %v16_v56 }
  0x10   :  { %361 = vmatpush1.bf16.msra.mxu1 %v140_v46  ;;  %v15_v2 = vld [vmem:[%s1065_s0 + $0x18] sm:$0xff]  ;;  %v81_v4 = vld [vmem:[%s1065_s0 + $0x228] sm:$0xff]  ;;  %v12_v7 = vld [vmem:[%s1065_s0] sm:$0xff]  ;;  %v136_v9 = vpack.c.bf16 %v86_v0, %v84_v63 }
  0x11   :  { %248 = vmatpush1.bf16.msra.mxu0 %v108_v26  ;;  %362 = vmatprep.subr.bf16.mxu1 %v139_v52  ;;  %v83_v5 = vld [vmem:[%s1065_s0 + $0x238] sm:$0xff]  ;;  %v14_v8 = vld [vmem:[%s1065_s0 + $0x10] sm:$0xff]  ;;  %v101_v10 = vpack.c.bf16 %v15_v2, %v13_v1  ;;  %v73_v11 = vld [vmem:[%s1065_s0 + $0x1e8] sm:$0xff] }
  0x12   :  { %249 = vmatprep.subr.bf16.mxu0 %v107_v30  ;;  %v135_v12 = vpack.c.bf16 %v83_v5, %v81_v4  ;;  %v80_v13 = vld [vmem:[%s1065_s0 + $0x220] sm:$0xff]  ;;  %v82_v14 = vld [vmem:[%s1065_s0 + $0x230] sm:$0xff]  ;;  %v75_v15 = vld [vmem:[%s1065_s0 + $0x1f8] sm:$0xff]  ;;  %v100_v18 = vpack.c.bf16 %v14_v8, %v12_v7 }
  0x13   :  { %v77_v16 = vld [vmem:[%s1065_s0 + $0x208] sm:$0xff]  ;;  %v79_v17 = vld [vmem:[%s1065_s0 + $0x218] sm:$0xff]  ;;  %v72_v19 = vld [vmem:[%s1065_s0 + $0x1e0] sm:$0xff]  ;;  %v134_v21 = vpack.c.bf16 %v82_v14, %v80_v13  ;;  %v131_v22 = vpack.c.bf16 %v75_v15, %v73_v11 }
  0x14   :  { %363 = vmatpush1.bf16.msra.mxu1 %v138_v57  ;;  %v74_v20 = vld [vmem:[%s1065_s0 + $0x1f0] sm:$0xff]  ;;  %v69_v23 = vld [vmem:[%s1065_s0 + $0x1c8] sm:$0xff]  ;;  %v133_v24 = vpack.c.bf16 %v79_v17, %v77_v16  ;;  %v76_v25 = vld [vmem:[%s1065_s0 + $0x200] sm:$0xff] }
  0x15   :  { %250 = vmatpush1.bf16.msra.mxu0 %v106_v42  ;;  %364 = vmatprep.subr.bf16.mxu1 %v137_v62  ;;  %v78_v26 = vld [vmem:[%s1065_s0 + $0x210] sm:$0xff]  ;;  %v71_v27 = vld [vmem:[%s1065_s0 + $0x1d8] sm:$0xff]  ;;  %v145_v28 = vld [vmem:[%s1066_s1 + $0x8] sm:$0xff]  ;;  %v130_v31 = vpack.c.bf16 %v74_v20, %v72_v19 }
  0x16   :  { %251 = vmatprep.subr.bf16.mxu0 %v105_v47  ;;  %v148_v29 = vld [vmem:[%s1066_s1 + $0x20] sm:$0xff]  ;;  %v132_v32 = vpack.c.bf16 %v78_v26, %v76_v25  ;;  %v146_v33 = vld [vmem:[%s1066_s1 + $0x10] sm:$0xff]  ;;  %v149_v34 = vld [vmem:[%s1066_s1 + $0x28] sm:$0xff]  ;;  %v129_v35 = vpack.c.bf16 %v71_v27, %v69_v23 }
  0x17   :  { %v193_v30 = vpack.c.bf16 %v148_v29, %v145_v28  ;;  %v68_v36 = vld [vmem:[%s1065_s0 + $0x1c0] sm:$0xff]  ;;  %v70_v37 = vld [vmem:[%s1065_s0 + $0x1d0] sm:$0xff]  ;;  %v65_v38 = vld [vmem:[%s1065_s0 + $0x1a8] sm:$0xff]  ;;  %v194_v40 = vpack.c.bf16 %v149_v34, %v146_v33 }
  0x18   :  { %365 = vmatpush1.bf16.msra.mxu1 %v136_v9  ;;  %v67_v39 = vld [vmem:[%s1065_s0 + $0x1b8] sm:$0xff]  ;;  %v128_v41 = vpack.c.bf16 %v70_v37, %v68_v36  ;;  %v64_v43 = vld [vmem:[%s1065_s0 + $0x1a0] sm:$0xff]  ;;  %v66_v44 = vld [vmem:[%s1065_s0 + $0x1b0] sm:$0xff] }
  0x19   :  { %252 = vmatpush1.bf16.msra.mxu0 %v104_v55  ;;  %366 = vmatprep.subr.bf16.mxu1 %v135_v12  ;;  %v127_v42 = vpack.c.bf16 %v67_v39, %v65_v38  ;;  %v61_v45 = vld [vmem:[%s1065_s0 + $0x188] sm:$0xff]  ;;  %v63_v46 = vld [vmem:[%s1065_s0 + $0x198] sm:$0xff]  ;;  %v126_v47 = vpack.c.bf16 %v66_v44, %v64_v43  ;;  %v152_v48 = vld [vmem:[%s1066_s1 + $0x40] sm:$0xff] }
  0x1a   :  { %253 = vmatprep.subr.bf16.mxu0 %v103_v60  ;;  %273 = vmatprep.mubr.bf16.mxu0 %v193_v30  ;;  %v155_v49 = vld [vmem:[%s1066_s1 + $0x58] sm:$0xff]  ;;  %v125_v50 = vpack.c.bf16 %v63_v46, %v61_v45  ;;  %v60_v51 = vld [vmem:[%s1065_s0 + $0x180] sm:$0xff]  ;;  %v62_v52 = vld [vmem:[%s1065_s0 + $0x190] sm:$0xff] }
  0x1b   :  { %v57_v53 = vld [vmem:[%s1065_s0 + $0x168] sm:$0xff]  ;;  %v59_v54 = vld [vmem:[%s1065_s0 + $0x178] sm:$0xff]  ;;  %v197_v55 = vpack.c.bf16 %v155_v49, %v152_v48  ;;  %v124_v56 = vpack.c.bf16 %v62_v52, %v60_v51  ;;  %v56_v58 = vld [vmem:[%s1065_s0 + $0x160] sm:$0xff] }
  0x1c   :  { %367 = vmatpush1.bf16.msra.mxu1 %v134_v21  ;;  %v123_v57 = vpack.c.bf16 %v59_v54, %v57_v53  ;;  %v58_v59 = vld [vmem:[%s1065_s0 + $0x170] sm:$0xff]  ;;  %v53_v60 = vld [vmem:[%s1065_s0 + $0x148] sm:$0xff]  ;;  %v55_v61 = vld [vmem:[%s1065_s0 + $0x158] sm:$0xff] }
  0x1d   :  { %254 = vmatpush1.bf16.msra.mxu0 %v102_v6  ;;  %368 = vmatprep.subr.bf16.mxu1 %v133_v24  ;;  %v122_v62 = vpack.c.bf16 %v58_v59, %v56_v58  ;;  %v158_v63 = vld [vmem:[%s1066_s1 + $0x70] sm:$0xff]  ;;  %v161_v0 = vld [vmem:[%s1066_s1 + $0x88] sm:$0xff]  ;;  %v121_v1 = vpack.c.bf16 %v55_v61, %v53_v60  ;;  %v52_v2 = vld [vmem:[%s1065_s0 + $0x140] sm:$0xff] }
  0x1e   :  { %255 = vmatprep.subr.bf16.mxu0 %v101_v10  ;;  %v54_v4 = vld [vmem:[%s1065_s0 + $0x150] sm:$0xff]  ;;  %v49_v5 = vld [vmem:[%s1065_s0 + $0x128] sm:$0xff]  ;;  %v51_v6 = vld [vmem:[%s1065_s0 + $0x138] sm:$0xff]  ;;  %v200_v7 = vpack.c.bf16 %v161_v0, %v158_v63 }
  0x1f   :  { %v120_v8 = vpack.c.bf16 %v54_v4, %v52_v2  ;;  %v119_v9 = vpack.c.bf16 %v51_v6, %v49_v5  ;;  %v48_v10 = vld [vmem:[%s1065_s0 + $0x120] sm:$0xff]  ;;  %v50_v11 = vld [vmem:[%s1065_s0 + $0x130] sm:$0xff]  ;;  %v45_v12 = vld [vmem:[%s1065_s0 + $0x108] sm:$0xff] }
  0x20   :  { %369 = vmatpush1.bf16.msra.mxu1 %v132_v32  ;;  %v47_v13 = vld [vmem:[%s1065_s0 + $0x118] sm:$0xff]  ;;  %v118_v14 = vpack.c.bf16 %v50_v11, %v48_v10  ;;  %v164_v15 = vld [vmem:[%s1066_s1 + $0xa0] sm:$0xff]  ;;  %v46_v19 = vld [vmem:[%s1065_s0 + $0x110] sm:$0xff] }
  0x21   :  { %256 = vmatpush1.bf16.msra.mxu0 %v100_v18  ;;  %v167_v16 = vld [vmem:[%s1066_s1 + $0xb8] sm:$0xff]  ;;  %v117_v17 = vpack.c.bf16 %v47_v13, %v45_v12  ;;  %v44_v18 = vld [vmem:[%s1065_s0 + $0x100] sm:$0xff]  ;;  %v154_v25 = vld [vmem:[%s1066_s1 + $0x50] sm:$0xff] }
  0x22   :  { %257 = vmatprep.subr.bf16.mxu0 %v131_v22  ;;  %v203_v20 = vpack.c.bf16 %v167_v16, %v164_v15  ;;  %v116_v21 = vpack.c.bf16 %v46_v19, %v44_v18  ;;  %v144_v22 = vld [vmem:[%s1066_s1] sm:$0xff]  ;;  %v147_v23 = vld [vmem:[%s1066_s1 + $0x18] sm:$0xff]  ;;  %v170_v28 = vld [vmem:[%s1066_s1 + $0xd0] sm:$0xff] }
  0x23   :  { %504 = vmatmul.mubr.msk.bf16.vlgmr.msra.gmra.mxu1 %vm216_vm0, %v194_v40  ;;  %v151_v24 = vld [vmem:[%s1066_s1 + $0x38] sm:$0xff]  ;;  %v192_v26 = vpack.c.bf16 %v147_v23, %v144_v22  ;;  %v173_v29 = vld [vmem:[%s1066_s1 + $0xe8] sm:$0xff]  ;;  %v160_v34 = vld [vmem:[%s1066_s1 + $0x80] sm:$0xff] }
  0x24   :  { %396 = vmatprep.mubr.bf16.mxu1 %v513_v3  ;;  %v196_v27 = vpack.c.bf16 %v154_v25, %v151_v24  ;;  %v206_v30 = vpack.c.bf16 %v173_v29, %v170_v28  ;;  %v153_v32 = vld [vmem:[%s1066_s1 + $0x48] sm:$0xff]  ;;  %v176_v37 = vld [vmem:[%s1066_s1 + $0x100] sm:$0xff]  ;;  %v179_v38 = vld [vmem:[%s1066_s1 + $0x118] sm:$0xff] }
  0x25   :  { %258 = vmatpush2.bf16.msra.mxu0 %v130_v31  ;;  %v150_v31 = vld [vmem:[%s1066_s1 + $0x30] sm:$0xff]  ;;  %v157_v33 = vld [vmem:[%s1066_s1 + $0x68] sm:$0xff]  ;;  %v209_v39 = vpack.c.bf16 %v179_v38, %v176_v37  ;;  %v156_v40 = vld [vmem:[%s1066_s1 + $0x60] sm:$0xff] }
  0x26   :  { %259 = vmatprep.subr.bf16.mxu0 %v129_v35  ;;  %v195_v35 = vpack.c.bf16 %v153_v32, %v150_v31  ;;  %v199_v36 = vpack.c.bf16 %v160_v34, %v157_v33  ;;  %v166_v43 = vld [vmem:[%s1066_s1 + $0xb0] sm:$0xff]  ;;  %v169_v51 = vld [vmem:[%s1066_s1 + $0xc8] sm:$0xff]  ;;  %v172_v52 = vld [vmem:[%s1066_s1 + $0xe0] sm:$0xff] }
  0x27   :  { %v182_v46 = vld [vmem:[%s1066_s1 + $0x130] sm:$0xff]  ;;  %v205_v54 = vpack.c.bf16 %v172_v52, %v169_v51  ;;  %v168_v58 = vld [vmem:[%s1066_s1 + $0xc0] sm:$0xff]  ;;  %v171_v59 = vld [vmem:[%s1066_s1 + $0xd8] sm:$0xff] }
  0x28   :  { %v162_v49 = vld [vmem:[%s1066_s1 + $0x90] sm:$0xff]  ;;  %v204_v61 = vpack.c.bf16 %v171_v59, %v168_v58  ;;  %v177_v0 = vld [vmem:[%s1066_s1 + $0x108] sm:$0xff]  ;;  %v184_v2 = vld [vmem:[%s1066_s1 + $0x140] sm:$0xff] }
  0x29   :  { %260 = vmatpush2.bf16.msra.mxu0 %v128_v41  ;;  %v159_v41 = vld [vmem:[%s1066_s1 + $0x78] sm:$0xff]  ;;  %v178_v60 = vld [vmem:[%s1066_s1 + $0x110] sm:$0xff]  ;;  %v180_v6 = vld [vmem:[%s1066_s1 + $0x120] sm:$0xff] }
  0x2a   :  { %261 = vmatprep.subr.bf16.mxu0 %v127_v42  ;;  %v163_v42 = vld [vmem:[%s1066_s1 + $0x98] sm:$0xff]  ;;  %v198_v44 = vpack.c.bf16 %v159_v41, %v156_v40  ;;  %v174_v63 = vld [vmem:[%s1066_s1 + $0xf0] sm:$0xff]  ;;  %v189_v13 = vld [vmem:[%s1066_s1 + $0x168] sm:$0xff] }
  0x2b   :  { %505 = vmatmul.mubr.msk.bf16.gmra.mxu1 %vm216_vm0, %v197_v55  ;;  %v202_v45 = vpack.c.bf16 %v166_v43, %v163_v42  ;;  %v188_v55 = vld [vmem:[%s1066_s1 + $0x160] sm:$0xff]  ;;  %v207_v4 = vpack.c.bf16 %v177_v0, %v174_v63  ;;  %v186_v12 = vld [vmem:[%s1066_s1 + $0x150] sm:$0xff] }
  0x2c   :  { %406 = vmatprep.mubr.bf16.mxu1 %v513_v3 }
  0x2d   :  { %262 = vmatpush2.bf16.msra.mxu0 %v126_v47  ;;  %v185_v47 = vld [vmem:[%s1066_s1 + $0x148] sm:$0xff] }
  0x2e   :  { %263 = vmatprep.subr.bf16.mxu0 %v125_v50  ;;  %v212_v48 = vpack.c.bf16 %v185_v47, %v182_v46  ;;  %v165_v50 = vld [vmem:[%s1066_s1 + $0xa8] sm:$0xff] }
  0x2f   :  { %v201_v53 = vpack.c.bf16 %v165_v50, %v162_v49 }
  0x31   :  { %264 = vmatpush2.bf16.msra.mxu0 %v124_v56  ;;  %v191_v56 = vld [vmem:[%s1066_s1 + $0x178] sm:$0xff] }
  0x32   :  { %265 = vmatprep.subr.bf16.mxu0 %v123_v57  ;;  %v215_v57 = vpack.c.bf16 %v191_v56, %v188_v55 }
  0x33   :  { %506 = vmatmul.mubr.msk.bf16.gmra.mxu1 %vm216_vm0, %v200_v7  ;;  %v183_v7 = vld [vmem:[%s1066_s1 + $0x138] sm:$0xff] }
  0x34   :  { %416 = vmatprep.mubr.bf16.mxu1 %v513_v3  ;;  %v210_v10 = vpack.c.bf16 %v183_v7, %v180_v6 }
  0x35   :  { %266 = vmatpush2.bf16.msra.mxu0 %v122_v62 }
  0x36   :  { %267 = vmatprep.subr.bf16.mxu0 %v121_v1  ;;  %v181_v1 = vld [vmem:[%s1066_s1 + $0x128] sm:$0xff] }
  0x37   :  { %v211_v5 = vpack.c.bf16 %v184_v2, %v181_v1 }
  0x39   :  { %268 = vmatpush2.bf16.msra.mxu0 %v120_v8  ;;  %v187_v8 = vld [vmem:[%s1066_s1 + $0x158] sm:$0xff] }
  0x3a   :  { %269 = vmatprep.subr.bf16.mxu0 %v119_v9  ;;  %v190_v9 = vld [vmem:[%s1066_s1 + $0x170] sm:$0xff] }
  0x3b   :  { %507 = vmatmul.mubr.msk.bf16.gmra.mxu1 %vm216_vm0, %v203_v20  ;;  %v214_v11 = vpack.c.bf16 %v190_v9, %v187_v8 }
  0x3c   :  { %426 = vmatprep.mubr.bf16.mxu1 %v513_v3 }
  0x3d   :  { %270 = vmatpush2.bf16.msra.mxu0 %v118_v14  ;;  %v213_v14 = vpack.c.bf16 %v189_v13, %v186_v12 }
  0x3e   :  { %271 = vmatprep.subr.bf16.mxu0 %v117_v17 }
  0x41   :  { %272 = vmatpush2.bf16.msra.mxu0 %v116_v21 }
  0x43   :  { %508 = vmatmul.mubr.msk.bf16.gmra.mxu1 %vm216_vm0, %v206_v30 }
  0x44   :  { %274 = vmatmul.mubr.bf16.vlgmr.msra.gmra.mxu0 %v192_v26  ;;  %436 = vmatprep.mubr.bf16.mxu1 %v513_v3 }
  0x45   :  { %283 = vmatprep.mubr.bf16.mxu0 %v196_v27 }
  0x4b   :  { %509 = vmatmul.mubr.msk.bf16.gmra.mxu1 %vm216_vm0, %v209_v39 }
  0x4c   :  { %284 = vmatmul.mubr.bf16.gmra.mxu0 %v195_v35  ;;  %446 = vmatprep.mubr.bf16.mxu1 %v513_v3 }
  0x4d   :  { %293 = vmatprep.mubr.bf16.mxu0 %v199_v36 }
  0x53   :  { %510 = vmatmul.mubr.msk.bf16.gmra.mxu1 %vm216_vm0, %v212_v48 }
  0x54   :  { %294 = vmatmul.mubr.bf16.gmra.mxu0 %v198_v44  ;;  %456 = vmatprep.mubr.bf16.mxu1 %v513_v3  ;;  %v175_v3 = vld [vmem:[%s1066_s1 + $0xf8] sm:$0xff] }
  0x55   :  { %303 = vmatprep.mubr.bf16.mxu0 %v202_v45  ;;  %v208_v62 = vpack.c.bf16 %v178_v60, %v175_v3 }
  0x5b   :  { %511 = vmatmul.mubr.msk.bf16.gmra.mxu1 %vm216_vm0, %v215_v57 }
  0x5c   :  { %304 = vmatmul.mubr.bf16.gmra.mxu0 %v201_v53 }
  0x5d   :  { %313 = vmatprep.mubr.bf16.mxu0 %v205_v54 }
  0x64   :  { %314 = vmatmul.mubr.bf16.gmra.mxu0 %v204_v61 }
  0x65   :  { %323 = vmatprep.mubr.bf16.mxu0 %v208_v62 }
  0x6c   :  { %324 = vmatmul.mubr.bf16.gmra.mxu0 %v207_v4 }
  0x6d   :  { %333 = vmatprep.mubr.bf16.mxu0 %v211_v5 }
  0x74   :  { %334 = vmatmul.mubr.bf16.gmra.mxu0 %v210_v10 }
  0x75   :  { %343 = vmatprep.mubr.bf16.mxu0 %v214_v11 }
  0x7c   :  { %344 = vmatmul.mubr.bf16.gmra.mxu0 %v213_v14 }
  0xe3   :  { %v388_v15 = vpop.f32.mrf.mxu1 }
  0xe5   :  { %v390_v16 = vpop.f32.mrf.mxu1 }
  0xe7   :  { %v392_v17 = vpop.f32.mrf.mxu1 }
  0xe9   :  { %v394_v18 = vpop.f32.mrf.mxu1 }
  0xeb   :  { %v398_v19 = vpop.f32.mrf.mxu1 }
  0xed   :  { %v400_v20 = vpop.f32.mrf.mxu1 }
  0xef   :  { %v402_v21 = vpop.f32.mrf.mxu1 }
  0xf1   :  { %v404_v22 = vpop.f32.mrf.mxu1 }
  0xf3   :  { %v408_v23 = vpop.f32.mrf.mxu1 }
  0xf5   :  { %v410_v24 = vpop.f32.mrf.mxu1 }
  0xf7   :  { %v412_v25 = vpop.f32.mrf.mxu1 }
  0xf9   :  { %v414_v26 = vpop.f32.mrf.mxu1 }
  0xfb   :  { %v418_v27 = vpop.f32.mrf.mxu1 }
  0xfd   :  { %v420_v28 = vpop.f32.mrf.mxu1 }
  0xff   :  { %v422_v30 = vpop.f32.mrf.mxu1 }
 0x101   :  { %v424_v33 = vpop.f32.mrf.mxu1 }
 0x103   :  { %v428_v36 = vpop.f32.mrf.mxu1 }
 0x104   :  { %v275_v29 = vpop.f32.mrf.mxu0 }
 0x105   :  { %v389_v31 = vadd.f32 %v388_v15, %v275_v29  ;;  %v430_v39 = vpop.f32.mrf.mxu1 }
 0x106   :  { %v277_v32 = vpop.f32.mrf.mxu0 }
 0x107   :  { %467 = vst [vmem:[%s1067_s2] sm:$0xff] %v389_v31  ;;  %v391_v34 = vadd.f32 %v390_v16, %v277_v32  ;;  %v432_v44 = vpop.f32.mrf.mxu1 }
 0x108   :  { %v279_v35 = vpop.f32.mrf.mxu0 }
 0x109   :  { %469 = vst.msk [vmem:[%s1067_s2 + $0x8] sm:$0xff] %vm468_vm1, %v391_v34  ;;  %v393_v37 = vadd.f32 %v392_v17, %v279_v35  ;;  %v434_v49 = vpop.f32.mrf.mxu1 }
 0x10a   :  { %v281_v38 = vpop.f32.mrf.mxu0 }
 0x10b   :  { %470 = vst [vmem:[%s1067_s2 + $0x10] sm:$0xff] %v393_v37  ;;  %v395_v40 = vadd.f32 %v394_v18, %v281_v38  ;;  %v438_v54 = vpop.f32.mrf.mxu1 }
 0x10c   :  { %v285_v41 = vpop.f32.mrf.mxu0 }
 0x10d   :  { %471 = vst.msk [vmem:[%s1067_s2 + $0x18] sm:$0xff] %vm468_vm1, %v395_v40  ;;  %v399_v42 = vadd.f32 %v398_v19, %v285_v41  ;;  %v440_v59 = vpop.f32.mrf.mxu1 }
 0x10e   :  { %v287_v43 = vpop.f32.mrf.mxu0 }
 0x10f   :  { %472 = vst [vmem:[%s1067_s2 + $0x20] sm:$0xff] %v399_v42  ;;  %v401_v45 = vadd.f32 %v400_v20, %v287_v43  ;;  %v442_v63 = vpop.f32.mrf.mxu1 }
 0x110   :  { %v289_v46 = vpop.f32.mrf.mxu0 }
 0x111   :  { %473 = vst.msk [vmem:[%s1067_s2 + $0x28] sm:$0xff] %vm468_vm1, %v401_v45  ;;  %v403_v47 = vadd.f32 %v402_v21, %v289_v46  ;;  %v444_v5 = vpop.f32.mrf.mxu1 }
 0x112   :  { %v291_v48 = vpop.f32.mrf.mxu0 }
 0x113   :  { %474 = vst [vmem:[%s1067_s2 + $0x30] sm:$0xff] %v403_v47  ;;  %v405_v50 = vadd.f32 %v404_v22, %v291_v48  ;;  %v448_v10 = vpop.f32.mrf.mxu1 }
 0x114   :  { %v295_v51 = vpop.f32.mrf.mxu0 }
 0x115   :  { %475 = vst.msk [vmem:[%s1067_s2 + $0x38] sm:$0xff] %vm468_vm1, %v405_v50  ;;  %v409_v52 = vadd.f32 %v408_v23, %v295_v51  ;;  %v450_v15 = vpop.f32.mrf.mxu1 }
 0x116   :  { %v297_v53 = vpop.f32.mrf.mxu0 }
 0x117   :  { %476 = vst [vmem:[%s1067_s2 + $0x40] sm:$0xff] %v409_v52  ;;  %v411_v55 = vadd.f32 %v410_v24, %v297_v53  ;;  %v452_v20 = vpop.f32.mrf.mxu1 }
 0x118   :  { %v299_v56 = vpop.f32.mrf.mxu0 }
 0x119   :  { %477 = vst.msk [vmem:[%s1067_s2 + $0x48] sm:$0xff] %vm468_vm1, %v411_v55  ;;  %v413_v57 = vadd.f32 %v412_v25, %v299_v56  ;;  %v454_v25 = vpop.f32.mrf.mxu1 }
 0x11a   :  { %v301_v58 = vpop.f32.mrf.mxu0 }
 0x11b   :  { %478 = vst [vmem:[%s1067_s2 + $0x50] sm:$0xff] %v413_v57  ;;  %v415_v3 = vadd.f32 %v414_v26, %v301_v58 }
 0x11c   :  { %v305_v60 = vpop.f32.mrf.mxu0 }
 0x11d   :  { %479 = vst.msk [vmem:[%s1067_s2 + $0x58] sm:$0xff] %vm468_vm1, %v415_v3  ;;  %v419_v61 = vadd.f32 %v418_v27, %v305_v60 }
 0x11e   :  { %v307_v62 = vpop.f32.mrf.mxu0 }
 0x11f   :  { %480 = vst [vmem:[%s1067_s2 + $0x60] sm:$0xff] %v419_v61  ;;  %v421_v0 = vadd.f32 %v420_v28, %v307_v62 }
 0x120   :  { %v309_v1 = vpop.f32.mrf.mxu0 }
 0x121   :  { %481 = vst.msk [vmem:[%s1067_s2 + $0x68] sm:$0xff] %vm468_vm1, %v421_v0  ;;  %v423_v2 = vadd.f32 %v422_v30, %v309_v1  ;;  %v458_v30 = vpop.f32.mrf.mxu1 }
 0x122   :  { %v311_v4 = vpop.f32.mrf.mxu0 }
 0x123   :  { %482 = vst [vmem:[%s1067_s2 + $0x70] sm:$0xff] %v423_v2  ;;  %v425_v6 = vadd.f32 %v424_v33, %v311_v4  ;;  %v460_v34 = vpop.f32.mrf.mxu1 }
 0x124   :  { %v315_v7 = vpop.f32.mrf.mxu0 }
 0x125   :  { %483 = vst.msk [vmem:[%s1067_s2 + $0x78] sm:$0xff] %vm468_vm1, %v425_v6  ;;  %v429_v8 = vadd.f32 %v428_v36, %v315_v7 }
 0x126   :  { %v317_v9 = vpop.f32.mrf.mxu0 }
 0x127   :  { %484 = vst [vmem:[%s1067_s2 + $0x80] sm:$0xff] %v429_v8  ;;  %v431_v11 = vadd.f32 %v430_v39, %v317_v9  ;;  %v462_v39 = vpop.f32.mrf.mxu1 }
 0x128   :  { %v319_v12 = vpop.f32.mrf.mxu0 }
 0x129   :  { %485 = vst.msk [vmem:[%s1067_s2 + $0x88] sm:$0xff] %vm468_vm1, %v431_v11  ;;  %v433_v13 = vadd.f32 %v432_v44, %v319_v12  ;;  %v464_v44 = vpop.f32.mrf.mxu1 }
 0x12a   :  { %v321_v14 = vpop.f32.mrf.mxu0 }
 0x12b   :  { %486 = vst [vmem:[%s1067_s2 + $0x90] sm:$0xff] %v433_v13  ;;  %v435_v16 = vadd.f32 %v434_v49, %v321_v14 }
 0x12c   :  { %v325_v17 = vpop.f32.mrf.mxu0 }
 0x12d   :  { %487 = vst.msk [vmem:[%s1067_s2 + $0x98] sm:$0xff] %vm468_vm1, %v435_v16  ;;  %v439_v18 = vadd.f32 %v438_v54, %v325_v17 }
 0x12e   :  { %v327_v19 = vpop.f32.mrf.mxu0 }
 0x12f   :  { %488 = vst [vmem:[%s1067_s2 + $0xa0] sm:$0xff] %v439_v18  ;;  %v441_v21 = vadd.f32 %v440_v59, %v327_v19 }
 0x130   :  { %v329_v22 = vpop.f32.mrf.mxu0 }
 0x131   :  { %489 = vst.msk [vmem:[%s1067_s2 + $0xa8] sm:$0xff] %vm468_vm1, %v441_v21  ;;  %v443_v23 = vadd.f32 %v442_v63, %v329_v22 }
 0x132   :  { %v331_v24 = vpop.f32.mrf.mxu0 }
 0x133   :  { %490 = vst [vmem:[%s1067_s2 + $0xb0] sm:$0xff] %v443_v23  ;;  %v445_v26 = vadd.f32 %v444_v5, %v331_v24 }
 0x134   :  { %v335_v27 = vpop.f32.mrf.mxu0 }
 0x135   :  { %491 = vst.msk [vmem:[%s1067_s2 + $0xb8] sm:$0xff] %vm468_vm1, %v445_v26  ;;  %v449_v28 = vadd.f32 %v448_v10, %v335_v27 }
 0x136   :  { %v337_v29 = vpop.f32.mrf.mxu0 }
 0x137   :  { %492 = vst [vmem:[%s1067_s2 + $0xc0] sm:$0xff] %v449_v28  ;;  %v451_v31 = vadd.f32 %v450_v15, %v337_v29 }
 0x138   :  { %v339_v32 = vpop.f32.mrf.mxu0 }
 0x139   :  { %493 = vst.msk [vmem:[%s1067_s2 + $0xc8] sm:$0xff] %vm468_vm1, %v451_v31  ;;  %v453_v33 = vadd.f32 %v452_v20, %v339_v32 }
 0x13a   :  { %v341_v35 = vpop.f32.mrf.mxu0 }
 0x13b   :  { %494 = vst [vmem:[%s1067_s2 + $0xd0] sm:$0xff] %v453_v33  ;;  %v455_v36 = vadd.f32 %v454_v25, %v341_v35 }
 0x13c   :  { %v345_v37 = vpop.f32.mrf.mxu0 }
 0x13d   :  { %495 = vst.msk [vmem:[%s1067_s2 + $0xd8] sm:$0xff] %vm468_vm1, %v455_v36  ;;  %v459_v38 = vadd.f32 %v458_v30, %v345_v37 }
 0x13e   :  { %v347_v40 = vpop.f32.mrf.mxu0 }
 0x13f   :  { %496 = vst [vmem:[%s1067_s2 + $0xe0] sm:$0xff] %v459_v38  ;;  %v461_v41 = vadd.f32 %v460_v34, %v347_v40 }
 0x140   :  { %v349_v42 = vpop.f32.mrf.mxu0 }
 0x141   :  { %497 = vst.msk [vmem:[%s1067_s2 + $0xe8] sm:$0xff] %vm468_vm1, %v461_v41  ;;  %v463_v43 = vadd.f32 %v462_v39, %v349_v42 }
 0x142   :  { %v351_v45 = vpop.f32.mrf.mxu0 }
 0x143   :  { %498 = vst [vmem:[%s1067_s2 + $0xf0] sm:$0xff] %v463_v43  ;;  %v465_v46 = vadd.f32 %v464_v44, %v351_v45 }
 0x145   :  { %499 = vst.msk [vmem:[%s1067_s2 + $0xf8] sm:$0xff] %vm468_vm1, %v465_v46 }

</bundles_post_ra>
